<compile_context>
chip_gen: v6e
topology: v6e:2x2x1
jax: 0.10.0
libtpu: 0.0.40
codegen_flags: <defaults>
</compile_context>

<pallas_src>
import math

import jax
import jax.numpy as jnp
import numpy as np
from jax.experimental import pallas as pl
from jax.experimental.pallas import tpu as pltpu

_LANE = 128
_PAD_LOGIT = -1e4  # softplus(1e4) == 1e4 exactly in f32 -> masked elements contribute 0


def _fold_lanes(x):
    """Reduce the lane dim (power-of-two multiple of 128) to 128 with 128-aligned VPU adds."""
    w = x.shape[-1]
    while w > _LANE:
        w //= 2
        x = x[:, :w] + x[:, w:]
    return x


def bce_loss_weight(ypred, ytrue):
    """ypred (logits), ytrue: arrays of shape (N, C, H, W). Returns scalar f32 loss."""
    assert ypred.shape == ytrue.shape
    N = int(ypred.shape[0])
    M = int(np.prod(ypred.shape[1:]))
    itemsize = max(jnp.dtype(ypred.dtype).itemsize, jnp.dtype(ytrue.dtype).itemsize)
    sub = 8 if itemsize >= 4 else (16 if itemsize == 2 else 32)

    # ---- Row packing: (N, M) -> (N*R, M/R). Pure metadata reshape, never padded. ----
    r0 = sub // math.gcd(N, sub)
    R = r0 if (M % r0 == 0) else 1
    rows = N * R
    m_per_row = M // R

    # ---- Row blocking for large batches (keeps lane tiles wide, adds a parallel axis). ----
    MAX_ROW_BLOCK = 1024
    row_block = rows
    if rows > MAX_ROW_BLOCK:
        for cand in range(MAX_ROW_BLOCK, sub - 1, -1):
            if rows % cand == 0 and cand % sub == 0:
                row_block = cand
                break
    grid_r = rows // row_block

    # ---- Lane tiling: power-of-two multiple of 128, ~1 MiB per input block. ----
    target_block_bytes = 1 << 20
    lanes_needed = pl.cdiv(m_per_row, _LANE)
    max_d_budget = max(1, target_block_bytes // (row_block * itemsize * _LANE))
    d = 1
    while d * 2 <= max_d_budget and d < lanes_needed:
        d *= 2
    tile_m = d * _LANE
    n_k = pl.cdiv(m_per_row, tile_m)

    # ---- Megacore split of the reduction axis (v7x) when rows give no parallelism. ----
    P = 2 if (grid_r == 1 and n_k >= 2) else 1
    k_per_p = pl.cdiv(n_k, P)
    needs_mask = (P * k_per_p * tile_m) != m_per_row  # ragged tail and/or duplicated tile

    yp2 = ypred.reshape(rows, m_per_row)
    yt2 = ytrue.reshape(rows, m_per_row)

    if P * k_per_p > n_k:
        def _kidx(p, k):  # clamp the duplicated (fully-masked) tile in-bounds
            return jnp.minimum(p * k_per_p + k, n_k - 1)
    else:
        def _kidx(p, k):
            return p * k_per_p + k

    def kernel(yp_ref, yt_ref, t_ref, pos_ref, neg_ref):
        k = pl.program_id(2)

        @pl.when(k == 0)
        def _init():
            zero = jnp.zeros((row_block, _LANE), jnp.float32)
            t_ref[...] = zero
            pos_ref[...] = zero
            neg_ref[...] = zero

        yp = yp_ref[...].astype(jnp.float32)
        yt = yt_ref[...].astype(jnp.float32)

        if needs_mask:  # trace-time gate: zero cost when every tile is full
            gk = pl.program_id(1) * k_per_p + k
            limit = m_per_row - gk * tile_m
            col = jax.lax.broadcasted_iota(jnp.int32, yp.shape, 1)
            valid = col < limit
            yp = jnp.where(valid, yp, _PAD_LOGIT)  # => (yp + s) == 0 exactly
            yt = jnp.where(valid, yt, 0.0)

        # Single stable softplus: s = softplus(-yp)
        #   log sigmoid(yp) = -s ;  log(1 - sigmoid(yp)) = -(yp + s)
        z = jnp.exp(-jnp.abs(yp))
        s = jnp.log(1.0 + z) - jnp.minimum(yp, 0.0)

        # Per-lane partial sums (negations applied once in the JAX epilogue).
        t_ref[...] += _fold_lanes(yt)
        pos_ref[...] += _fold_lanes(yt * s)                    # = -sum(yt * log p)
        neg_ref[...] += _fold_lanes((1.0 - yt) * (yp + s))     # = -sum((1-yt) * log(1-p))

    in_spec = pl.BlockSpec((row_block, tile_m), lambda r, p, k: (r, _kidx(p, k)))
    out_spec = pl.BlockSpec((None, row_block, _LANE), lambda r, p, k: (p, r, 0))
    out_sds = jax.ShapeDtypeStruct((P, rows, _LANE), jnp.float32)

    cost = pl.CostEstimate(
        flops=int(14 * rows * m_per_row),
        transcendentals=int(2 * rows * m_per_row),
        bytes_accessed=int(
            rows * m_per_row
            * (jnp.dtype(ypred.dtype).itemsize + jnp.dtype(ytrue.dtype).itemsize)
            + 3 * P * rows * _LANE * 4
        ),
    )

    t_lane, pos_lane, neg_lane = pl.pallas_call(
        kernel,
        out_shape=(out_sds, out_sds, out_sds),
        grid_spec=pltpu.PrefetchScalarGridSpec(
            num_scalar_prefetch=0,
            grid=(grid_r, P, k_per_p),
            in_specs=[in_spec, in_spec],
            out_specs=[out_spec, out_spec, out_spec],
        ),
        compiler_params=pltpu.CompilerParams(
            dimension_semantics=("parallel", "parallel", "arbitrary"),
            vmem_limit_bytes=48 * 1024 * 1024,
        ),
        cost_estimate=cost,
    )(yp2, yt2)

    # Tiny epilogue: fold core split + lanes + packed rows, per-batch weighting, batch mean.
    def per_batch(a):
        return a.sum(axis=(0, 2)).reshape(N, R).sum(axis=1)   # (N,)

    t = per_batch(t_lane)        # sum(ytrue)
    pos = per_batch(pos_lane)    # -sum(ytrue * log p)
    neg = per_batch(neg_lane)    # -sum((1-ytrue) * log(1-p))

    inv_m = jnp.float32(1.0 / M)
    w = t * inv_m
    # loss = -mean((1-w)*mean(yt*log p) + w*mean((1-yt)*log(1-p)))
    #      =  mean(((1-w)*pos + w*neg) / M)
    return jnp.mean(((1.0 - w) * pos + w * neg) * inv_m)


def _reference(ypred, ytrue):
    p = jax.nn.sigmoid(ypred.astype(jnp.float32))
    t = ytrue.astype(jnp.float32)
    weight = jnp.mean(t, axis=(1, 2, 3))
    loss_pos = (1.0 - weight) * jnp.mean(t * jnp.log(p), axis=(1, 2, 3))
    loss_neg = weight * jnp.mean((1.0 - t) * jnp.log(1.0 - p), axis=(1, 2, 3))
    return -jnp.mean(loss_pos + loss_neg)


if __name__ == "__main__":
    key = jax.random.PRNGKey(0)
    k1, k2 = jax.random.split(key)

    N, C, H, W = 2, 4, 16, 16
    ypred = jax.random.normal(k1, (N, C, H, W), dtype=jnp.float32)                      # logits
    ytrue = jax.random.bernoulli(k2, p=0.3, shape=(N, C, H, W)).astype(jnp.float32)

    loss = jax.block_until_ready(jax.jit(bce_loss_weight)(ypred, ytrue))
    ref = jax.block_until_ready(_reference(ypred, ytrue))
    np.testing.assert_allclose(np.asarray(loss), np.asarray(ref), rtol=1e-5, atol=1e-6)

    print("KERNEL_OK")
</pallas_src>

<mosaic_0001>
module attributes {stable_mosaic.version = 11 : i64} {
  func.func @kernel(%arg0: i32, %arg1: i32, %arg2: i32, %arg3: memref<8x256xf32, #tpu.memory_space<vmem>>, %arg4: memref<8x256xf32, #tpu.memory_space<vmem>>, %arg5: memref<1x8x128xf32, #tpu.memory_space<vmem>>, %arg6: memref<1x8x128xf32, #tpu.memory_space<vmem>>, %arg7: memref<1x8x128xf32, #tpu.memory_space<vmem>>) attributes {dimension_semantics = [#tpu.dimension_semantics<parallel>, #tpu.dimension_semantics<parallel>, #tpu.dimension_semantics<arbitrary>], iteration_bounds = array<i64: 1, 1, 1>, scalar_prefetch = 0 : i64, scratch_operands = 0 : i64, tpu.core_type = #tpu.core_type<tc>, window_params = [{transform_indices = @transform_0, window_bounds = array<i64: 8, 256>}, {transform_indices = @transform_1, window_bounds = array<i64: 8, 256>}, {transform_indices = @transform_2, window_bounds = array<i64: 1, 8, 128>}, {transform_indices = @transform_3, window_bounds = array<i64: 1, 8, 128>}, {transform_indices = @transform_4, window_bounds = array<i64: 1, 8, 128>}]} {
    %c0_i32 = arith.constant 0 : i32
    %0 = arith.cmpi eq, %arg2, %c0_i32 : i32
    %1 = arith.extui %0 : i1 to i32
    %c0_i32_0 = arith.constant 0 : i32
    %2 = arith.cmpi ne, %1, %c0_i32_0 : i32
    scf.if %2 {
      %cst_25 = arith.constant 0.000000e+00 : f32
      %47 = vector.broadcast %cst_25 : f32 to vector<8x128xf32>
      %c0_26 = arith.constant 0 : index
      %c0_27 = arith.constant 0 : index
      %c0_28 = arith.constant 0 : index
      %48 = vector.load %arg5[%c0_26, %c0_27, %c0_28] : memref<1x8x128xf32, #tpu.memory_space<vmem>>, vector<1x8x128xf32>
      %49 = vector.shape_cast %48 : vector<1x8x128xf32> to vector<8x128xf32>
      %50 = vector.shape_cast %47 : vector<8x128xf32> to vector<1x8x128xf32>
      tpu.vector_store %arg5[%c0_26, %c0_27, %c0_28], %50 {strides = array<i32>} : memref<1x8x128xf32, #tpu.memory_space<vmem>>, vector<1x8x128xf32>,
      %c0_29 = arith.constant 0 : index
      %c0_30 = arith.constant 0 : index
      %c0_31 = arith.constant 0 : index
      %51 = vector.load %arg6[%c0_29, %c0_30, %c0_31] : memref<1x8x128xf32, #tpu.memory_space<vmem>>, vector<1x8x128xf32>
      %52 = vector.shape_cast %51 : vector<1x8x128xf32> to vector<8x128xf32>
      %53 = vector.shape_cast %47 : vector<8x128xf32> to vector<1x8x128xf32>
      tpu.vector_store %arg6[%c0_29, %c0_30, %c0_31], %53 {strides = array<i32>} : memref<1x8x128xf32, #tpu.memory_space<vmem>>, vector<1x8x128xf32>,
      %c0_32 = arith.constant 0 : index
      %c0_33 = arith.constant 0 : index
      %c0_34 = arith.constant 0 : index
      %54 = vector.load %arg7[%c0_32, %c0_33, %c0_34] : memref<1x8x128xf32, #tpu.memory_space<vmem>>, vector<1x8x128xf32>
      %55 = vector.shape_cast %54 : vector<1x8x128xf32> to vector<8x128xf32>
      %56 = vector.shape_cast %47 : vector<8x128xf32> to vector<1x8x128xf32>
      tpu.vector_store %arg7[%c0_32, %c0_33, %c0_34], %56 {strides = array<i32>} : memref<1x8x128xf32, #tpu.memory_space<vmem>>, vector<1x8x128xf32>,
    } else {
    }
    %c0 = arith.constant 0 : index
    %c0_1 = arith.constant 0 : index
    %3 = vector.load %arg3[%c0, %c0_1] : memref<8x256xf32, #tpu.memory_space<vmem>>, vector<8x256xf32>
    %c0_2 = arith.constant 0 : index
    %c0_3 = arith.constant 0 : index
    %4 = vector.load %arg4[%c0_2, %c0_3] : memref<8x256xf32, #tpu.memory_space<vmem>>, vector<8x256xf32>
    %5 = math.absf %3 : vector<8x256xf32>
    %cst = arith.constant 0.000000e+00 : f32
    %6 = vector.broadcast %cst : f32 to vector<8x256xf32>
    %7 = arith.subf %6, %5 : vector<8x256xf32>
    %8 = math.exp %7 : vector<8x256xf32>
    %cst_4 = arith.constant 1.000000e+00 : f32
    %9 = vector.broadcast %cst_4 : f32 to vector<8x256xf32>
    %10 = arith.addf %9, %8 : vector<8x256xf32>
    %11 = math.log %10 : vector<8x256xf32>
    %cst_5 = arith.constant 0.000000e+00 : f32
    %12 = vector.broadcast %cst_5 : f32 to vector<8x256xf32>
    %13 = arith.minimumf %3, %12 : vector<8x256xf32>
    %14 = arith.subf %11, %13 : vector<8x256xf32>
    %c0_6 = arith.constant 0 : index
    %c0_7 = arith.constant 0 : index
    %c0_8 = arith.constant 0 : index
    %15 = vector.load %arg5[%c0_6, %c0_7, %c0_8] : memref<1x8x128xf32, #tpu.memory_space<vmem>>, vector<1x8x128xf32>
    %16 = vector.shape_cast %15 : vector<1x8x128xf32> to vector<8x128xf32>
    %17 = vector.extract_strided_slice %4 {offsets = [0, 0], sizes = [8, 128], strides = [1, 1]} : vector<8x256xf32> to vector<8x128xf32>
    %18 = vector.extract_strided_slice %4 {offsets = [0, 128], sizes = [8, 128], strides = [1, 1]} : vector<8x256xf32> to vector<8x128xf32>
    %19 = arith.addf %17, %18 : vector<8x128xf32>
    %20 = arith.addf %16, %19 : vector<8x128xf32>
    %c0_9 = arith.constant 0 : index
    %c0_10 = arith.constant 0 : index
    %c0_11 = arith.constant 0 : index
    %21 = vector.load %arg5[%c0_9, %c0_10, %c0_11] : memref<1x8x128xf32, #tpu.memory_space<vmem>>, vector<1x8x128xf32>
    %22 = vector.shape_cast %21 : vector<1x8x128xf32> to vector<8x128xf32>
    %23 = vector.shape_cast %20 : vector<8x128xf32> to vector<1x8x128xf32>
    tpu.vector_store %arg5[%c0_9, %c0_10, %c0_11], %23 {strides = array<i32>} : memref<1x8x128xf32, #tpu.memory_space<vmem>>, vector<1x8x128xf32>,
    %c0_12 = arith.constant 0 : index
    %c0_13 = arith.constant 0 : index
    %c0_14 = arith.constant 0 : index
    %24 = vector.load %arg6[%c0_12, %c0_13, %c0_14] : memref<1x8x128xf32, #tpu.memory_space<vmem>>, vector<1x8x128xf32>
    %25 = vector.shape_cast %24 : vector<1x8x128xf32> to vector<8x128xf32>
    %26 = arith.mulf %4, %14 : vector<8x256xf32>
    %27 = vector.extract_strided_slice %26 {offsets = [0, 0], sizes = [8, 128], strides = [1, 1]} : vector<8x256xf32> to vector<8x128xf32>
    %28 = vector.extract_strided_slice %26 {offsets = [0, 128], sizes = [8, 128], strides = [1, 1]} : vector<8x256xf32> to vector<8x128xf32>
    %29 = arith.addf %27, %28 : vector<8x128xf32>
    %30 = arith.addf %25, %29 : vector<8x128xf32>
    %c0_15 = arith.constant 0 : index
    %c0_16 = arith.constant 0 : index
    %c0_17 = arith.constant 0 : index
    %31 = vector.load %arg6[%c0_15, %c0_16, %c0_17] : memref<1x8x128xf32, #tpu.memory_space<vmem>>, vector<1x8x128xf32>
    %32 = vector.shape_cast %31 : vector<1x8x128xf32> to vector<8x128xf32>
    %33 = vector.shape_cast %30 : vector<8x128xf32> to vector<1x8x128xf32>
    tpu.vector_store %arg6[%c0_15, %c0_16, %c0_17], %33 {strides = array<i32>} : memref<1x8x128xf32, #tpu.memory_space<vmem>>, vector<1x8x128xf32>,
    %c0_18 = arith.constant 0 : index
    %c0_19 = arith.constant 0 : index
    %c0_20 = arith.constant 0 : index
    %34 = vector.load %arg7[%c0_18, %c0_19, %c0_20] : memref<1x8x128xf32, #tpu.memory_space<vmem>>, vector<1x8x128xf32>
    %35 = vector.shape_cast %34 : vector<1x8x128xf32> to vector<8x128xf32>
    %cst_21 = arith.constant 1.000000e+00 : f32
    %36 = vector.broadcast %cst_21 : f32 to vector<8x256xf32>
    %37 = arith.subf %36, %4 : vector<8x256xf32>
    %38 = arith.addf %3, %14 : vector<8x256xf32>
    %39 = arith.mulf %37, %38 : vector<8x256xf32>
    %40 = vector.extract_strided_slice %39 {offsets = [0, 0], sizes = [8, 128], strides = [1, 1]} : vector<8x256xf32> to vector<8x128xf32>
    %41 = vector.extract_strided_slice %39 {offsets = [0, 128], sizes = [8, 128], strides = [1, 1]} : vector<8x256xf32> to vector<8x128xf32>
    %42 = arith.addf %40, %41 : vector<8x128xf32>
    %43 = arith.addf %35, %42 : vector<8x128xf32>
    %c0_22 = arith.constant 0 : index
    %c0_23 = arith.constant 0 : index
    %c0_24 = arith.constant 0 : index
    %44 = vector.load %arg7[%c0_22, %c0_23, %c0_24] : memref<1x8x128xf32, #tpu.memory_space<vmem>>, vector<1x8x128xf32>
    %45 = vector.shape_cast %44 : vector<1x8x128xf32> to vector<8x128xf32>
    %46 = vector.shape_cast %43 : vector<8x128xf32> to vector<1x8x128xf32>
    tpu.vector_store %arg7[%c0_22, %c0_23, %c0_24], %46 {strides = array<i32>} : memref<1x8x128xf32, #tpu.memory_space<vmem>>, vector<1x8x128xf32>,
    return
  }
  func.func @transform_0(%arg0: i32, %arg1: i32, %arg2: i32) -> (i32, i32) {
    %c1_i32 = arith.constant 1 : i32
    %0 = arith.muli %arg1, %c1_i32 : i32
    %1 = arith.addi %0, %arg2 : i32
    %c0_i32 = arith.constant 0 : i32
    return %arg0, %1 : i32, i32
  }
  func.func @transform_1(%arg0: i32, %arg1: i32, %arg2: i32) -> (i32, i32) {
    %c1_i32 = arith.constant 1 : i32
    %0 = arith.muli %arg1, %c1_i32 : i32
    %1 = arith.addi %0, %arg2 : i32
    %c0_i32 = arith.constant 0 : i32
    return %arg0, %1 : i32, i32
  }
  func.func @transform_2(%arg0: i32, %arg1: i32, %arg2: i32) -> (i32, i32, i32) {
    %c0_i32 = arith.constant 0 : i32
    %c0_i32_0 = arith.constant 0 : i32
    return %arg1, %arg0, %c0_i32 : i32, i32, i32
  }
  func.func @transform_3(%arg0: i32, %arg1: i32, %arg2: i32) -> (i32, i32, i32) {
    %c0_i32 = arith.constant 0 : i32
    %c0_i32_0 = arith.constant 0 : i32
    return %arg1, %arg0, %c0_i32 : i32, i32, i32
  }
  func.func @transform_4(%arg0: i32, %arg1: i32, %arg2: i32) -> (i32, i32, i32) {
    %c0_i32 = arith.constant 0 : i32
    %c0_i32_0 = arith.constant 0 : i32
    return %arg1, %arg0, %c0_i32 : i32, i32, i32
  }
}

</mosaic_0001>

<bundles_post_ra>
// kernel: bce_loss_weight.1
= control target key start
LH: loop header
LB: loop body
LE: loop exit
PB: predicated region body
PF: predicated region fallthrough
CT: control target
= control target key end

     0   :  { %s186_s1 = inlined_call_operand.vmem [shape: f32[8,256], index: 1, kind: input, shape index: {}]   ;;  %s187_s0 = inlined_call_operand.vmem [shape: f32[8,256], index: 0, kind: input, shape index: {}]   ;;  %s188_s2 = inlined_call_operand.vmem [shape: f32[1,8,128], index: 2, kind: output, shape index: {0}]   ;;  %s189_s3 = inlined_call_operand.vmem [shape: f32[1,8,128], index: 3, kind: output, shape index: {1}]   ;;  %s190_s4 = inlined_call_operand.vmem [shape: f32[1,8,128], index: 4, kind: output, shape index: {2}]  }
   0x1   :  { %v67_v0 = vld [vmem:[%s186_s1] sm:$0xff]  ;;  %v68_v1 = vld [vmem:[%s186_s1 + $0x8] sm:$0xff] }
   0x2   :  { %v65_v2 = vld [vmem:[%s187_s0] sm:$0xff]  ;;  %v88_v3 = vadd.f32 %v68_v1, %v67_v0  ;;  %v66_v4 = vld [vmem:[%s187_s0 + $0x8] sm:$0xff]  ;;  %v98_v22 = vsub.f32 1.0, %v67_v0  ;;  %v99_v24 = vsub.f32 1.0, %v68_v1 }
   0x3   :  { %v69_v5 = vand.u32 2147483647, %v65_v2  ;;  %v70_v6 = vand.u32 2147483647, %v66_v4  ;;  %v83_v15 = vmin.f32 %v65_v2, 0.0  ;;  %v84_v17 = vmin.f32 %v66_v4, 0.0 }
   0x4   :  { %90 = vst [vmem:[%s188_s2] sm:$0xff] %v88_v3 }
   0x5   :  { %v71_v7 = vsub.f32 0.0, %v69_v5  ;;  %v72_v8 = vsub.f32 0.0, %v70_v6 }
   0x7   :  { %v73_v9 = vmul.f32 1.442695, %v71_v7  ;;  %v75_v10 = vmul.f32 1.442695, %v72_v8 }
   0x9   :  { %132 = vpow2.f32 %v73_v9 }
   0xa   :  { %134 = vpow2.f32 %v75_v10 }
  0x16   :  { %v133_v11 = vpop.eup %132 }
  0x17   :  { %v135_v12 = vpop.eup %134  ;;  %v77_v13 = vadd.f32 1.0, %v133_v11 }
  0x18   :  { %v78_v14 = vadd.f32 1.0, %v135_v12 }
  0x19   :  { %136 = vlog2.f32 %v77_v13 }
  0x1a   :  { %138 = vlog2.f32 %v78_v14 }
  0x26   :  { %v137_v16 = vpop.eup %136 }
  0x27   :  { %v139_v18 = vpop.eup %138  ;;  %v80_v19 = vmul.f32 0.6931472, %v137_v16 }
  0x28   :  { %v82_v20 = vmul.f32 0.6931472, %v139_v18 }
  0x29   :  { %v85_v21 = vsub.f32 %v80_v19, %v83_v15 }
  0x2a   :  { %v86_v23 = vsub.f32 %v82_v20, %v84_v17 }
  0x2b   :  { %v92_v25 = vmul.f32 %v85_v21, %v67_v0  ;;  %v100_v26 = vadd.f32 %v85_v21, %v65_v2 }
  0x2c   :  { %v93_v27 = vmul.f32 %v86_v23, %v68_v1  ;;  %v101_v28 = vadd.f32 %v86_v23, %v66_v4 }
  0x2d   :  { %v102_v29 = vmul.f32 %v100_v26, %v98_v22 }
  0x2e   :  { %v94_v30 = vadd.f32 %v93_v27, %v92_v25  ;;  %v103_v31 = vmul.f32 %v101_v28, %v99_v24 }
  0x30   :  { %v104_v32 = vadd.f32 %v103_v31, %v102_v29  ;;  %96 = vst [vmem:[%s189_s3] sm:$0xff] %v94_v30 }
  0x32   :  { %106 = vst [vmem:[%s190_s4] sm:$0xff] %v104_v32 }

</bundles_post_ra>
